<compile_context>
chip_gen: v5e
topology: v5e:2x2
jax: 0.10.0
libtpu: 0.0.40
codegen_flags: <defaults>
</compile_context>

<pallas_src>
import jax
import jax.numpy as jnp
from jax.experimental import pallas as pl
from jax.experimental.pallas import tpu as pltpu


def _round_up(n, m):
    return ((n + m - 1) // m) * m


def _cdiv(a, b):
    return (a + b - 1) // b


def _vmem_budget_bytes():
    """Half of physical VMEM (generation aware), with a v7x-safe fallback."""
    phys = None
    try:
        info = pltpu.get_tpu_info()
        phys = getattr(info, "vmem_capacity_bytes", None)
    except Exception:
        phys = None
    if not phys:
        phys = 64 * 1024 * 1024  # v7x physical VMEM; safe lower bound everywhere
    return int(phys) // 2


def _pick_block_m(kp, hp, g, x_itemsize, granule, budget):
    """Largest batch tile (in packed rows) whose working set fits the VMEM budget."""
    lane = 128
    kp_l = _round_up(kp, lane)           # x lanes (physically lane padded)
    hp_l = _round_up(hp, lane)           # hidden lanes
    g_l = _round_up(g, lane)             # output lanes (lane padded)
    per_row = (2 * kp_l * x_itemsize     # x tile, double buffered
               + 3 * hp_l * 4            # h, z and compiler temps (f32)
               + 2 * g_l * 4)            # output tile, double buffered, lane padded
    fixed = 2 * kp_l * hp_l * 4 + (1 << 20)   # resident w1 (2 bufs) + b1/w2/slack
    usable = max(budget * 3 // 4 - fixed, per_row * granule)
    bm = usable // per_row
    bm = max(granule, (bm // granule) * granule)
    return int(min(bm, 8192))


def _make_kernel(num_groups, hidden):
    def mlp_kernel(x_ref, w1_ref, b1_ref, w2_ref, b2_ref, o_ref):
        # Layer 1 on the MXU: (TM, Kp) @ (Kp, G*H), f32 accumulation, + bias, ReLU.
        h = jnp.dot(x_ref[...], w1_ref[...], preferred_element_type=jnp.float32)
        h = jnp.maximum(h + b1_ref[...], 0.0)                 # (TM, G*H) f32
        # Layer 2 off the MXU: VPU multiply + per-group XLU lane reduction.
        z = h * w2_ref[...]                                   # (TM, G*H) f32
        tm = z.shape[0]
        if num_groups == 1:
            zg = jnp.sum(z, axis=-1, keepdims=True)           # (TM, 1)
        else:
            # Assemble the G group sums into a (TM, G) value with broadcast + select
            # (avoids unaligned lane concatenation) so sigmoid runs in one pass.
            lane = jax.lax.broadcasted_iota(jnp.int32, (tm, num_groups), 1)
            zg = jnp.zeros((tm, num_groups), jnp.float32)
            for g in range(num_groups):
                col = jnp.sum(z[:, g * hidden:(g + 1) * hidden],
                              axis=-1, keepdims=True)         # (TM, 1)
                zg = jnp.where(lane == g, col, zg)
        zg = zg + b2_ref[0, 0]                                # scalar bias from SMEM
        o_ref[...] = jax.nn.sigmoid(zg).astype(o_ref.dtype)
    return mlp_kernel


def two_layer_net(x, w1, b1, w2, b2, *, block_m=None):
    """Forward pass of TwoLayerNet: sigmoid(relu(x @ w1 + b1) @ w2 + b2).

    x:  (B, F)  float32 or bfloat16 (bf16 MXU path taken only when x is already bf16)
    w1: (F, H)  PyTorch layer1.weight transposed;  b1: (1, H) or (H,)
    w2: (H, 1)  PyTorch layer2.weight transposed;  b2: (1, 1) or scalar
    Returns (B, 1) float32.
    """
    B, F = x.shape
    H = w1.shape[1]
    assert w1.shape == (F, H) and w2.shape == (H, 1)

    compute_dtype = jnp.bfloat16 if x.dtype == jnp.bfloat16 else jnp.float32
    granule = 16 if compute_dtype == jnp.bfloat16 else 8   # bf16 sublane packing is 16
    x_itemsize = jnp.dtype(compute_dtype).itemsize

    b1 = jnp.asarray(b1, jnp.float32).reshape(1, H)
    w2_row = jnp.asarray(w2, jnp.float32).reshape(1, H)    # (H,1) column -> (1,H) row
    b2 = jnp.asarray(b2, jnp.float32).reshape(1, 1)        # scalar, goes to SMEM

    # ---- K-packing: make the contraction dim lane dense when F divides 128 --------
    P = 128 // F if (F < 128 and 128 % F == 0) else 1
    if P > 1:
        Bp = _round_up(B, P)
        if Bp != B:  # rare (< P rows); the only case that forces a copy of x
            x = jnp.pad(x, ((0, Bp - B), (0, 0)))
        x_k = x.reshape(Bp // P, P * F)                      # free reshape when no pad
        w1_k = jnp.kron(jnp.eye(P, dtype=jnp.float32), jnp.asarray(w1, jnp.float32))
        b1_k = jnp.tile(b1, (1, P))                          # (1, P*H)
        w2_k = jnp.tile(w2_row, (1, P))                      # (1, P*H)
    else:
        x_k, w1_k, b1_k, w2_k = x, jnp.asarray(w1, jnp.float32), b1, w2_row

    rows, Kp = x_k.shape
    Hp = P * H

    # No cross-dtype cast of the big array: x keeps its storage dtype, weights follow.
    x_k = x_k.astype(compute_dtype)
    w1_k = w1_k.astype(compute_dtype)

    vmem_budget = _vmem_budget_bytes()

    # ---- Tile selection -------------------------------------------------------------
    if block_m is None:
        block_m = _pick_block_m(Kp, Hp, P, x_itemsize, granule, vmem_budget)
        block_m = min(block_m, _round_up(rows, granule))
        # If a large batch would land in a single tile, split it so the "parallel"
        # grid axis can span both TensorCores on v7x.
        if rows <= block_m and rows >= 2048:
            block_m = _round_up(_cdiv(rows, 2), granule)
    assert block_m > 0 and block_m % granule == 0

    grid = (_cdiv(rows, block_m),)   # ragged last tile handled by Pallas (no jnp.pad)

    out = pl.pallas_call(
        _make_kernel(P, H),
        out_shape=jax.ShapeDtypeStruct((rows, P), jnp.float32),
        grid_spec=pltpu.PrefetchScalarGridSpec(
            num_scalar_prefetch=0,
            grid=grid,
            in_specs=[
                pl.BlockSpec((block_m, Kp), lambda i: (i, 0)),      # x: pipelined tiles
                pl.BlockSpec((Kp, Hp), lambda i: (0, 0)),           # w1 (block-diag): resident
                pl.BlockSpec((1, Hp), lambda i: (0, 0)),            # b1: resident
                pl.BlockSpec((1, Hp), lambda i: (0, 0)),            # w2 row: resident
                pl.BlockSpec(memory_space=pltpu.MemorySpace.SMEM),  # b2: scalar in SMEM
            ],
            out_specs=pl.BlockSpec((block_m, P), lambda i: (i, 0)),
        ),
        compiler_params=pltpu.CompilerParams(
            dimension_semantics=("parallel",),        # independent batch tiles
            vmem_limit_bytes=int(vmem_budget),        # generation-aware scoped VMEM
        ),
    )(x_k, w1_k, b1_k, w2_k, b2)

    # (rows, P) -> (rows*P, 1); packed row r, group g is original batch row r*P + g.
    return out.reshape(rows * P, 1)[:B]


def reference(x, w1, b1, w2, b2):
    xf = jnp.asarray(x, jnp.float32)
    h = jnp.maximum(xf @ w1 + jnp.reshape(b1, (1, -1)), 0.0)
    return jax.nn.sigmoid(h @ w2 + jnp.reshape(b2, (1, 1)))


if __name__ == "__main__":
    key = jax.random.PRNGKey(0)
    k_x, k_w1, k_b1, k_w2, k_b2 = jax.random.split(key, 5)

    B = 8            # batch
    INPUT_SIZE = 32  # input_size
    HIDDEN = 64      # fixed by the module

    x = jax.random.normal(k_x, (B, INPUT_SIZE), dtype=jnp.float32)

    # Deterministic synthetic parameters (PyTorch nn.Linear-like uniform init),
    # stored pre-transposed: w1 is (in, out), w2 is (hidden, 1).
    lim1 = 1.0 / jnp.sqrt(INPUT_SIZE)
    lim2 = 1.0 / jnp.sqrt(HIDDEN)
    w1 = jax.random.uniform(k_w1, (INPUT_SIZE, HIDDEN), jnp.float32, -lim1, lim1)
    b1 = jax.random.uniform(k_b1, (1, HIDDEN), jnp.float32, -lim1, lim1)
    w2 = jax.random.uniform(k_w2, (HIDDEN, 1), jnp.float32, -lim2, lim2)
    b2 = jax.random.uniform(k_b2, (1, 1), jnp.float32, -lim2, lim2)

    ref = reference(x, w1, b1, w2, b2)

    # f32 path (K-packed, auto-sized tile).
    out = jax.block_until_ready(two_layer_net(x, w1, b1, w2, b2))
    assert out.shape == (B, 1)
    assert jnp.allclose(out, ref, atol=1e-5, rtol=1e-5), "f32 mismatch vs reference"

    # bf16 path: taken only because x is already stored in bf16 (no wrapper-side cast
    # pass over a large f32 x); f32 accumulation on the MXU, f32 post-matmul math.
    x_bf16 = x.astype(jnp.bfloat16)
    out_bf16 = jax.block_until_ready(two_layer_net(x_bf16, w1, b1, w2, b2))
    assert out_bf16.shape == (B, 1)
    assert jnp.allclose(out_bf16, ref, atol=2e-2, rtol=2e-2), "bf16 mismatch vs reference"

    # Multi-tile grid with a ragged last tile and B not a multiple of the pack factor.
    B2 = 101
    x2 = jax.random.normal(jax.random.PRNGKey(1), (B2, INPUT_SIZE), dtype=jnp.float32)
    out2 = jax.block_until_ready(two_layer_net(x2, w1, b1, w2, b2, block_m=8))
    ref2 = reference(x2, w1, b1, w2, b2)
    assert out2.shape == (B2, 1)
    assert jnp.allclose(out2, ref2, atol=1e-5, rtol=1e-5), "tiled/ragged mismatch vs reference"

    print("KERNEL_OK")
</pallas_src>

<mosaic_0001>
module attributes {stable_mosaic.version = 11 : i64} {
  func.func @mlp_kernel(%arg0: i32, %arg1: memref<8x128xf32, #tpu.memory_space<vmem>>, %arg2: memref<128x256xf32, #tpu.memory_space<vmem>>, %arg3: memref<1x256xf32, #tpu.memory_space<vmem>>, %arg4: memref<1x256xf32, #tpu.memory_space<vmem>>, %arg5: memref<1x1xf32, #tpu.memory_space<smem>>, %arg6: memref<8x4xf32, #tpu.memory_space<vmem>>) attributes {dimension_semantics = [#tpu.dimension_semantics<parallel>], iteration_bounds = array<i64: 1>, scalar_prefetch = 0 : i64, scratch_operands = 0 : i64, tpu.core_type = #tpu.core_type<tc>, window_params = [{transform_indices = @transform_0, window_bounds = array<i64: 8, 128>}, {pipeline_mode = #tpu.pipeline_mode<synchronous>, transform_indices = @transform_1, window_bounds = array<i64: 128, 256>}, {pipeline_mode = #tpu.pipeline_mode<synchronous>, transform_indices = @transform_2, window_bounds = array<i64: 1, 256>}, {pipeline_mode = #tpu.pipeline_mode<synchronous>, transform_indices = @transform_3, window_bounds = array<i64: 1, 256>}, {transform_indices = @transform_4, window_bounds = array<i64: 1, 1>}, {transform_indices = @transform_5, window_bounds = array<i64: 8, 4>}]} {
    %c0 = arith.constant 0 : index
    %c0_0 = arith.constant 0 : index
    %0 = vector.load %arg1[%c0, %c0_0] : memref<8x128xf32, #tpu.memory_space<vmem>>, vector<8x128xf32>
    %c0_1 = arith.constant 0 : index
    %c0_2 = arith.constant 0 : index
    %1 = vector.load %arg2[%c0_1, %c0_2] : memref<128x256xf32, #tpu.memory_space<vmem>>, vector<128x256xf32>
    %cst = arith.constant dense<0.000000e+00> : vector<8x256xf32>
    %2 = tpu.matmul %0, %1, %cst {dimension_numbers = #tpu.dot_dimension_numbers<[1], [0], [0], [1], [0, 0, 1, 1], [], []>} : vector<8x128xf32>, vector<128x256xf32>, vector<8x256xf32> -> vector<8x256xf32>
    %c0_3 = arith.constant 0 : index
    %c0_4 = arith.constant 0 : index
    %3 = vector.load %arg3[%c0_3, %c0_4] : memref<1x256xf32, #tpu.memory_space<vmem>>, vector<1x256xf32>
    %4 = vector.broadcast %3 : vector<1x256xf32> to vector<8x256xf32>
    %5 = arith.addf %2, %4 : vector<8x256xf32>
    %cst_5 = arith.constant 0.000000e+00 : f32
    %6 = vector.broadcast %cst_5 : f32 to vector<8x256xf32>
    %7 = arith.maximumf %5, %6 : vector<8x256xf32>
    %c0_6 = arith.constant 0 : index
    %c0_7 = arith.constant 0 : index
    %8 = vector.load %arg4[%c0_6, %c0_7] : memref<1x256xf32, #tpu.memory_space<vmem>>, vector<1x256xf32>
    %9 = vector.broadcast %8 : vector<1x256xf32> to vector<8x256xf32>
    %10 = arith.mulf %7, %9 : vector<8x256xf32>
    %11 = tpu.iota {dimensions = array<i32: 1>} : vector<8x4xi32>
    %cst_8 = arith.constant 0.000000e+00 : f32
    %12 = vector.broadcast %cst_8 : f32 to vector<8x4xf32>
    %13 = vector.extract_strided_slice %10 {offsets = [0, 0], sizes = [8, 64], strides = [1, 1]} : vector<8x256xf32> to vector<8x64xf32>
    %cst_9 = arith.constant dense<0.000000e+00> : vector<8xf32>
    %14 = vector.multi_reduction <add>, %13, %cst_9 [1] : vector<8x64xf32> to vector<8xf32>
    %15 = vector.shape_cast %14 : vector<8xf32> to vector<8x1xf32>
    %c0_i32 = arith.constant 0 : i32
    %16 = vector.broadcast %c0_i32 : i32 to vector<8x4xi32>
    %17 = arith.cmpi eq, %11, %16 : vector<8x4xi32>
    %18 = vector.shape_cast %15 : vector<8x1xf32> to vector<8x1xf32>
    %19 = vector.broadcast %18 : vector<8x1xf32> to vector<8x4xf32>
    %20 = arith.select %17, %19, %12 : vector<8x4xi1>, vector<8x4xf32>
    %21 = vector.extract_strided_slice %10 {offsets = [0, 64], sizes = [8, 64], strides = [1, 1]} : vector<8x256xf32> to vector<8x64xf32>
    %cst_10 = arith.constant dense<0.000000e+00> : vector<8xf32>
    %22 = vector.multi_reduction <add>, %21, %cst_10 [1] : vector<8x64xf32> to vector<8xf32>
    %23 = vector.shape_cast %22 : vector<8xf32> to vector<8x1xf32>
    %c1_i32 = arith.constant 1 : i32
    %24 = vector.broadcast %c1_i32 : i32 to vector<8x4xi32>
    %25 = arith.cmpi eq, %11, %24 : vector<8x4xi32>
    %26 = vector.shape_cast %23 : vector<8x1xf32> to vector<8x1xf32>
    %27 = vector.broadcast %26 : vector<8x1xf32> to vector<8x4xf32>
    %28 = arith.select %25, %27, %20 : vector<8x4xi1>, vector<8x4xf32>
    %29 = vector.extract_strided_slice %10 {offsets = [0, 128], sizes = [8, 64], strides = [1, 1]} : vector<8x256xf32> to vector<8x64xf32>
    %cst_11 = arith.constant dense<0.000000e+00> : vector<8xf32>
    %30 = vector.multi_reduction <add>, %29, %cst_11 [1] : vector<8x64xf32> to vector<8xf32>
    %31 = vector.shape_cast %30 : vector<8xf32> to vector<8x1xf32>
    %c2_i32 = arith.constant 2 : i32
    %32 = vector.broadcast %c2_i32 : i32 to vector<8x4xi32>
    %33 = arith.cmpi eq, %11, %32 : vector<8x4xi32>
    %34 = vector.shape_cast %31 : vector<8x1xf32> to vector<8x1xf32>
    %35 = vector.broadcast %34 : vector<8x1xf32> to vector<8x4xf32>
    %36 = arith.select %33, %35, %28 : vector<8x4xi1>, vector<8x4xf32>
    %37 = vector.extract_strided_slice %10 {offsets = [0, 192], sizes = [8, 64], strides = [1, 1]} : vector<8x256xf32> to vector<8x64xf32>
    %cst_12 = arith.constant dense<0.000000e+00> : vector<8xf32>
    %38 = vector.multi_reduction <add>, %37, %cst_12 [1] : vector<8x64xf32> to vector<8xf32>
    %39 = vector.shape_cast %38 : vector<8xf32> to vector<8x1xf32>
    %c3_i32 = arith.constant 3 : i32
    %40 = vector.broadcast %c3_i32 : i32 to vector<8x4xi32>
    %41 = arith.cmpi eq, %11, %40 : vector<8x4xi32>
    %42 = vector.shape_cast %39 : vector<8x1xf32> to vector<8x1xf32>
    %43 = vector.broadcast %42 : vector<8x1xf32> to vector<8x4xf32>
    %44 = arith.select %41, %43, %36 : vector<8x4xi1>, vector<8x4xf32>
    %c0_13 = arith.constant 0 : index
    %c0_14 = arith.constant 0 : index
    %45 = memref.load %arg5[%c0_13, %c0_14] : memref<1x1xf32, #tpu.memory_space<smem>>
    %46 = vector.broadcast %45 : f32 to vector<8x4xf32>
    %47 = arith.addf %44, %46 : vector<8x4xf32>
    %48 = arith.negf %47 : vector<8x4xf32>
    %49 = math.exp %48 : vector<8x4xf32>
    %cst_15 = arith.constant 1.000000e+00 : f32
    %50 = vector.broadcast %cst_15 : f32 to vector<8x4xf32>
    %51 = arith.addf %50, %49 : vector<8x4xf32>
    %52 = arith.divf %50, %51 : vector<8x4xf32>
    %c0_16 = arith.constant 0 : index
    %c0_17 = arith.constant 0 : index
    %53 = vector.load %arg6[%c0_16, %c0_17] : memref<8x4xf32, #tpu.memory_space<vmem>>, vector<8x4xf32>
    tpu.vector_store %arg6[%c0_16, %c0_17], %52 {strides = array<i32>} : memref<8x4xf32, #tpu.memory_space<vmem>>, vector<8x4xf32>,
    return
  }
  func.func @transform_0(%arg0: i32) -> (i32, i32) {
    %c0_i32 = arith.constant 0 : i32
    %c0_i32_0 = arith.constant 0 : i32
    return %arg0, %c0_i32 : i32, i32
  }
  func.func @transform_1(%arg0: i32) -> (i32, i32) {
    %c0_i32 = arith.constant 0 : i32
    %c0_i32_0 = arith.constant 0 : i32
    %c0_i32_1 = arith.constant 0 : i32
    return %c0_i32, %c0_i32_0 : i32, i32
  }
  func.func @transform_2(%arg0: i32) -> (i32, i32) {
    %c0_i32 = arith.constant 0 : i32
    %c0_i32_0 = arith.constant 0 : i32
    %c0_i32_1 = arith.constant 0 : i32
    return %c0_i32, %c0_i32_0 : i32, i32
  }
  func.func @transform_3(%arg0: i32) -> (i32, i32) {
    %c0_i32 = arith.constant 0 : i32
    %c0_i32_0 = arith.constant 0 : i32
    %c0_i32_1 = arith.constant 0 : i32
    return %c0_i32, %c0_i32_0 : i32, i32
  }
  func.func @transform_4(%arg0: i32) -> (i32, i32) {
    %c0_i32 = arith.constant 0 : i32
    %c0_i32_0 = arith.constant 0 : i32
    %c0_i32_1 = arith.constant 0 : i32
    return %c0_i32, %c0_i32_0 : i32, i32
  }
  func.func @transform_5(%arg0: i32) -> (i32, i32) {
    %c0_i32 = arith.constant 0 : i32
    %c0_i32_0 = arith.constant 0 : i32
    return %arg0, %c0_i32 : i32, i32
  }
}

</mosaic_0001>

<bundles_post_ra>
// kernel: tpu_custom_call.1
= control target key start
LH: loop header
LB: loop body
LE: loop exit
PB: predicated region body
PF: predicated region fallthrough
CT: control target
= control target key end

     0   :  { %11 = vsyncpa [#allocation4], 0  ;;  %s363_s0 = inlined_call_operand.vmem [shape: f32[2,128], index: 0, kind: input, shape index: {}]   ;;  %s364_s1 = inlined_call_operand.hbm [shape: f32[128,256], index: 1, kind: input, shape index: {}]   ;;  %s365_s2 = inlined_call_operand.hbm [shape: f32[1,256], index: 2, kind: input, shape index: {}]   ;;  %s366_s3 = inlined_call_operand.vmem [shape: f32[1,256], index: 3, kind: input, shape index: {}]   ;;  %s367_s4 = inlined_call_operand.<no memory space> [shape: f32[1,1], index: 4, kind: input, shape index: {}]   ;;  %s368_s5 = inlined_call_operand.hbm [shape: f32[2,4], index: 5, kind: output, shape index: {}]  }
   0x1   :  { %12 = vsyncpa [#allocation7], 0 }
   0x2   :  { %13 = vsyncpa [#allocation5], 0  ;;  %s20_s20 = sshll.u32 %s364_s1, 4  ;;  %s307_s21 = smov [#allocation3]   ;;  %s21_s20 = int_to_ptr.hbm [resolvable:$true] %s20_s20 }
   0x3   :  { %s22_s22 = sshll.u32 %s307_s21, 4  ;;  %s34_s25 = sshll.u32 %s365_s2, 4  ;;  %s23_s22 = int_to_ptr.vmem [resolvable:$true] %s22_s22  ;;  %s35_s25 = int_to_ptr.hbm [resolvable:$true] %s34_s25 }
   0x4   :  { %s308_s26 = smov 256   ;;  %s309_s27 = smov 16  }
   0x5   :  { %28 = dma.hbm_to_vmem [thread:$0]  %s21_s20, 4096, %s23_s22, [#allocation4], %s308_s26, %s308_s26, %s309_s27  }
   0x6   :  { %s310_s28 = smov [#allocation6]  }
   0x7   :  { %s36_s29 = sshll.u32 %s310_s28, 4  ;;  %s37_s29 = int_to_ptr.vmem [resolvable:$true] %s36_s29 }
   0x8   :  { %39 = dma.hbm_to_vmem [thread:$0]  %s35_s25, 32, %s37_s29, [#allocation7]  }
   0x9   :  { %301 = dma.done.wait [#allocation4], 4096  }
   0xa   :  { %302 = vsyncadd [#allocation4], 4294963200 }
   0xb   :  { %303 = dma.done.wait [#allocation7], 32  }
   0xc   :  { %304 = vsyncadd [#allocation7], 4294967264  ;;  %v83_v0 = vld [vmem:[#allocation3 + $0xf0] sm:$0xff]  ;;  %v81_v1 = vld [vmem:[#allocation3 + $0xe0] sm:$0xff]  ;;  %vm143_vm0 = vcmask 523264   ;;  %v141_v53 = vlaneseq  ;;  %v173_v60 = vstv %s367_s4  ;;  %vm194_vm7 = vcmask 31744  }
   0xd   :  { %91 = vmatpush.msra.mxu0 %v83_v0  ;;  %v84_v2 = vld [vmem:[#allocation3 + $0xf8] sm:$0xff]  ;;  %v79_v3 = vld [vmem:[#allocation3 + $0xd0] sm:$0xff]  ;;  %v82_v4 = vld [vmem:[#allocation3 + $0xe8] sm:$0xff] }
   0xe   :  { %111 = vmatpush.msra.mxu1 %v84_v2  ;;  %v80_v5 = vld [vmem:[#allocation3 + $0xd8] sm:$0xff]  ;;  %v77_v6 = vld [vmem:[#allocation3 + $0xc0] sm:$0xff]  ;;  %v78_v7 = vld [vmem:[#allocation3 + $0xc8] sm:$0xff]  ;;  %v142_v55 = vand.u32 127, %v141_v53 }
   0xf   :  { %92 = vmatpush.msra.mxu0 %v81_v1  ;;  %v75_v8 = vld [vmem:[#allocation3 + $0xb0] sm:$0xff]  ;;  %v76_v9 = vld [vmem:[#allocation3 + $0xb8] sm:$0xff]  ;;  %v73_v10 = vld [vmem:[#allocation3 + $0xa0] sm:$0xff] }
  0x10   :  { %112 = vmatpush.msra.mxu1 %v82_v4  ;;  %v74_v11 = vld [vmem:[#allocation3 + $0xa8] sm:$0xff]  ;;  %v71_v12 = vld [vmem:[#allocation3 + $0x90] sm:$0xff]  ;;  %v72_v13 = vld [vmem:[#allocation3 + $0x98] sm:$0xff]  ;;  %vm147_vm1 = vcmp.eq.s32.totalorder %v142_v55, 0  ;;  %vm156_vm2 = vcmp.eq.s32.totalorder %v142_v55, 1  ;;  %vm161_vm3 = vcmp.eq.s32.totalorder %v142_v55, 2 }
  0x11   :  { %93 = vmatpush.msra.mxu0 %v79_v3  ;;  %v69_v14 = vld [vmem:[#allocation3 + $0x80] sm:$0xff]  ;;  %v70_v15 = vld [vmem:[#allocation3 + $0x88] sm:$0xff]  ;;  %v67_v16 = vld [vmem:[#allocation3 + $0x70] sm:$0xff]  ;;  %vm170_vm4 = vcmp.eq.s32.totalorder %v142_v55, 3 }
  0x12   :  { %113 = vmatpush.msra.mxu1 %v80_v5  ;;  %v68_v17 = vld [vmem:[#allocation3 + $0x78] sm:$0xff]  ;;  %v65_v18 = vld [vmem:[#allocation3 + $0x60] sm:$0xff]  ;;  %v66_v19 = vld [vmem:[#allocation3 + $0x68] sm:$0xff] }
  0x13   :  { %94 = vmatpush.msra.mxu0 %v77_v6  ;;  %v63_v20 = vld [vmem:[#allocation3 + $0x50] sm:$0xff]  ;;  %v64_v21 = vld [vmem:[#allocation3 + $0x58] sm:$0xff]  ;;  %v61_v22 = vld [vmem:[#allocation3 + $0x40] sm:$0xff] }
  0x14   :  { %114 = vmatpush.msra.mxu1 %v78_v7  ;;  %v62_v23 = vld [vmem:[#allocation3 + $0x48] sm:$0xff]  ;;  %v59_v24 = vld [vmem:[#allocation3 + $0x30] sm:$0xff]  ;;  %v60_v25 = vld [vmem:[#allocation3 + $0x38] sm:$0xff] }
  0x15   :  { %95 = vmatpush.msra.mxu0 %v75_v8  ;;  %v57_v26 = vld [vmem:[#allocation3 + $0x20] sm:$0xff]  ;;  %v58_v27 = vld [vmem:[#allocation3 + $0x28] sm:$0xff]  ;;  %v55_v28 = vld [vmem:[#allocation3 + $0x10] sm:$0xff] }
  0x16   :  { %115 = vmatpush.msra.mxu1 %v76_v9  ;;  %v56_v29 = vld [vmem:[#allocation3 + $0x18] sm:$0xff]  ;;  %v53_v30 = vld [vmem:[#allocation3] sm:$0xff]  ;;  %v54_v32 = vld [vmem:[#allocation3 + $0x8] sm:$0xff] }
  0x17   :  { %96 = vmatpush.msra.mxu0 %v73_v10  ;;  %v52_v31 = vld [vmem:[%s363_s0] sm:$0xff]  ;;  %s311_s0 = smov 64  }
  0x18   :  { %116 = vmatpush.msra.mxu1 %v74_v11  ;;  %v85_v33 = vld [vmem:[#allocation6] sm:$0x3] }
  0x19   :  { %97 = vmatpush.msra.mxu0 %v71_v12  ;;  %v87_v34 = vperm.slane %v85_v33, 0  ;;  %v133_v35 = vld [vmem:[%s366_s3] sm:$0x3]  ;;  %v88_v36 = vperm.slane %v85_v33, 1 }
  0x1a   :  { %117 = vmatpush.msra.mxu1 %v72_v13  ;;  %v135_v39 = vperm.slane %v133_v35, 0  ;;  %v136_v42 = vperm.slane %v133_v35, 1 }
  0x1b   :  { %98 = vmatpush.msra.mxu0 %v69_v14 }
  0x1c   :  { %118 = vmatpush.msra.mxu1 %v70_v15 }
  0x1d   :  { %99 = vmatpush.msra.mxu0 %v67_v16 }
  0x1e   :  { %119 = vmatpush.msra.mxu1 %v68_v17 }
  0x1f   :  { %100 = vmatpush.msra.mxu0 %v65_v18 }
  0x20   :  { %120 = vmatpush.msra.mxu1 %v66_v19 }
  0x21   :  { %101 = vmatpush.msra.mxu0 %v63_v20 }
  0x22   :  { %121 = vmatpush.msra.mxu1 %v64_v21 }
  0x23   :  { %102 = vmatpush.msra.mxu0 %v61_v22 }
  0x24   :  { %122 = vmatpush.msra.mxu1 %v62_v23 }
  0x25   :  { %103 = vmatpush.msra.mxu0 %v59_v24 }
  0x26   :  { %123 = vmatpush.msra.mxu1 %v60_v25 }
  0x27   :  { %104 = vmatpush.msra.mxu0 %v57_v26 }
  0x28   :  { %124 = vmatpush.msra.mxu1 %v58_v27 }
  0x29   :  { %105 = vmatpush.msra.mxu0 %v55_v28 }
  0x2a   :  { %125 = vmatpush.msra.mxu1 %v56_v29 }
  0x2b   :  { %106 = vmatpush.msra.mxu0 %v53_v30 }
  0x2c   :  { %107 = vmatmul.f32.vlgmr.msra.gmra.mxu0 %v52_v31  ;;  %126 = vmatpush.msra.mxu1 %v54_v32 }
  0x2d   :  { %127 = vmatmul.f32.vlgmr.msra.gmra.mxu1 %v52_v31 }
  0xa9   :  { %v108_v37 = vpop.f32.mrf.mxu0 }
  0xaa   :  { %v109_v38 = vadd.f32 %v108_v37, %v87_v34  ;;  %v128_v40 = vpop.f32.mrf.mxu1 }
  0xab   :  { %v129_v41 = vadd.f32 %v128_v40, %v88_v36 }
  0xac   :  { %v131_v43 = vmax.f32 %v109_v38, 0.0 }
  0xad   :  { %v132_v44 = vmax.f32 %v129_v41, 0.0 }
  0xae   :  { %v139_v45 = vmul.f32 %v135_v39, %v131_v43 }
  0xaf   :  { %v140_v46 = vmul.f32 %v136_v42, %v132_v44 }
  0xb0   :  { %150 = vrot.lane.b32.xlu0 %v139_v45, %s311_s0  ;;  %v144_v47 = vsel %vm143_vm0, %v139_v45, 0.0 }
  0xb1   :  { %145 = vadd.xlane.f32.xlu1 %v144_v47  ;;  %v158_v48 = vsel %vm143_vm0, %v140_v46, 0.0 }
  0xb2   :  { %159 = vadd.xlane.f32.xlu2 %v158_v48 }
  0xb8   :  { %164 = vrot.lane.b32.xlu0 %v140_v46, %s311_s0 }
 0x122   :  { %v151_v49 = vpop.permute.xlu0 %150 }
 0x123   :  { %v153_v50 = vsel %vm143_vm0, %v151_v49, 0.0 }
 0x124   :  { %154 = vadd.xlane.f32.xlu1 %v153_v50  ;;  %v146_v54 = vpop.xlane.xlu1 %145 }
 0x125   :  { %v160_v56 = vpop.xlane.xlu2 %159  ;;  %v148_v58 = vsel %vm147_vm1, %v146_v54, 0.0 }
 0x12a   :  { %v165_v51 = vpop.permute.xlu0 %164 }
 0x12b   :  { %v167_v52 = vsel %vm143_vm0, %v165_v51, 0.0 }
 0x12c   :  { %168 = vadd.xlane.f32.xlu2 %v167_v52 }
 0x197   :  { %v155_v57 = vpop.xlane.xlu1 %154 }
 0x198   :  { %v157_v59 = vsel %vm156_vm2, %v155_v57, %v148_v58 }
 0x199   :  { %v162_v62 = vsel %vm161_vm3, %v160_v56, %v157_v59 }
 0x19f   :  { %v169_v61 = vpop.xlane.xlu2 %168 }
 0x1a0   :  { %v171_v63 = vsel %vm170_vm4, %v169_v61, %v162_v62 }
 0x1a1   :  { %v174_v0 = vadd.f32 %v173_v60, %v171_v63 }
 0x1a3   :  { %v216_v1 = vmul.f32 -1.442695, %v174_v0 }
 0x1a5   :  { %225 = vpow2.f32 %v216_v1 }
 0x1ab   :  { %v226_v2 = vpop.eup %225 }
 0x1ac   :  { %v178_v3 = vadd.f32 1.0, %v226_v2 }
 0x1ae   :  { %227 = vrcp.f32 %v178_v3  ;;  %v190_v7 = vand.u32 2147483648, %v178_v3  ;;  %v188_v9 = vand.u32 2147483647, %v178_v3  ;;  %vm184_vm6 = vweird.f32 %v178_v3 }
 0x1b0   :  { %v191_v11 = vor.u32 1.1754944e-38, %v190_v7  ;;  %vm189_vm9 = vcmp.eq.f32.partialorder %v188_v9, 8.507059e+37 }
 0x1b4   :  { %v228_v4 = vpop.eup %227 }
 0x1b5   :  { %v180_v5 = vmul.f32 %v228_v4, %v178_v3  ;;  %vm185_vm5 = vweird.f32 %v228_v4 }
 0x1b6   :  { %vm186_vm8 = vmor %vm184_vm6, %vm185_vm5 }
 0x1b7   :  { %v181_v6 = vsub.f32 1.0, %v180_v5 }
 0x1b9   :  { %v182_v8 = vmul.f32 %v228_v4, %v181_v6 }
 0x1bb   :  { %v183_v10 = vadd.f32 %v228_v4, %v182_v8 }
 0x1bd   :  { %v187_v12 = vsel %vm186_vm8, %v228_v4, %v183_v10 }
 0x1be   :  { %v192_v13 = vsel %vm189_vm9, %v191_v11, %v187_v12 }
 0x1bf   :  { %195 = vst.msk [vmem:[#allocation8] sm:$0xff] %vm194_vm7, %v192_v13 }
 0x1c0   :  { %199 = vsyncadd [#allocation5], 96  ;;  %s202_s9 = sshll.u32 %s368_s5, 4  ;;  %s312_s10 = smov [#allocation8]   ;;  %s203_s9 = int_to_ptr.hbm [resolvable:$true] %s202_s9 }
 0x1c1   :  { %s200_s11 = sshll.u32 %s312_s10, 4  ;;  %s313_s12 = smov 32   ;;  %s201_s11 = int_to_ptr.vmem [resolvable:$true] %s200_s11 }
 0x1c2   :  { %s314_s13 = smov 2  }
 0x1c3   :  { %208 = dma.vmem_to_hbm [thread:$0]  %s201_s11, 32, %s203_s9, [#allocation5], %s313_s12, %s313_s12, %s314_s13  }
 0x1c4   :  { %305 = dma.done.wait [#allocation5], 128  }
 0x1c5   :  { %306 = vsyncadd [#allocation5], 4294967168 }
 0x1c6   :  { %213 = vsyncpa [#allocation4], 1 }
 0x1c7   :  { %214 = vsyncpa [#allocation7], 1 }
 0x1c8   :  { %215 = vsyncpa [#allocation5], 1 }

</bundles_post_ra>
